<compile_context>
chip_gen: v7x
topology: tpu7x:2x2x1
jax: 0.10.0
libtpu: 0.0.40
codegen_flags: <defaults>
</compile_context>

<pallas_src>
import functools

import numpy as np

import jax
import jax.numpy as jnp
from jax.experimental import pallas as pl
from jax.experimental.pallas import tpu as pltpu


def _bilinear_matrix(out_size: int, in_size: int) -> np.ndarray:
    """Row-stochastic (out, in) matrix reproducing torch bilinear upsampling
    (align_corners=False) along one axis."""
    scale = in_size / out_size
    m = np.zeros((out_size, in_size), np.float32)
    for o in range(out_size):
        src = (o + 0.5) * scale - 0.5
        src = max(src, 0.0)
        i0 = min(int(np.floor(src)), in_size - 1)
        i1 = min(i0 + 1, in_size - 1)
        l1 = src - i0
        m[o, i0] += 1.0 - l1
        m[o, i1] += l1
    return m


def _pdn_head_kernel(l4_ref,      # (1, C4, H4*W4) bf16  backbone layer4 (flat spatial)
                     l3_ref,      # (1, C3, H*W)   bf16  backbone layer3 (flat spatial)
                     up_ref,      # (H4*W4, H*W)   bf16  bilinear interp matrix (transposed)
                     wl_ref,      # (K+1, C)       bf16  fc_landmarks weight (1x1 conv, no bias)
                     asq_ref,     # (K+1, 1)       f32   fc_landmarks.weight.sum(1) (precomputed)
                     mod_ref,     # (K+1, C)       f32   modulation (transposed)
                     wattr_ref,   # (A, C)         f32   fc_attrs weight
                     battr_ref,   # (1, A)         f32   fc_attrs bias
                     wcls_ref,    # (NC, A)        f32   fc_classes weight (no bias)
                     attr_ref,    # (1, 1, A)      f32   out: attr_scores
                     cls_ref,     # (1, 1, NC)     f32   out: class_scores
                     maps_ref,    # (1, K+1, H*W)  f32   out: attn_maps (flat spatial)
                     pf_ref,      # (1, K+1, C)    f32   out: part_features (landmark-major)
                     u_scr,       # (C4, H*W)      bf16  VMEM scratch: upsampled layer4
                     *, num_landmarks, c4, hw):
    K = num_landmarks
    inv_hw = 1.0 / float(hw)

    # 1) bilinear upsample of layer4 as ONE (C4,HW4)@(HW4,HW) bf16 MXU matmul.
    u_scr[...] = jnp.dot(l4_ref[0], up_ref[...],
                         preferred_element_type=jnp.float32).astype(u_scr.dtype)
    u = u_scr[...]                                                    # (C4, HW) bf16
    l3 = l3_ref[0]                                                    # (C3, HW) bf16

    # 2) fc_landmarks 1x1 conv split over the (up(l4) | l3) channel halves,
    #    so l3 is never copied into a concat scratch.
    ab = (jnp.dot(wl_ref[:, :c4], u, preferred_element_type=jnp.float32) +
          jnp.dot(wl_ref[:, c4:], l3, preferred_element_type=jnp.float32))  # (K+1, HW) f32

    # 3) Softmax2d(-(b_sq - 2*ab + a_sq)) over channels.  b_sq is constant per
    #    spatial position, so it cancels exactly in the channel softmax (dropped).
    logits = 2.0 * ab - asq_ref[...]                                  # (K+1, HW)
    logits = logits - jnp.max(logits, axis=0, keepdims=True)
    e = jnp.exp(logits)
    maps = e * pl.reciprocal(jnp.sum(e, axis=0, keepdims=True), approx=True)  # (K+1, HW)

    # 4) part pooling: pf[k, c] = mean_hw(maps[k] * x[c]), split over channel halves.
    maps_b = maps.astype(u.dtype)                                     # bf16 for the MXU
    pf4 = jax.lax.dot_general(maps_b, u, (((1,), (1,)), ((), ())),
                              preferred_element_type=jnp.float32)     # (K+1, C4)
    pf3 = jax.lax.dot_general(maps_b, l3, (((1,), (1,)), ((), ())),
                              preferred_element_type=jnp.float32)     # (K+1, C3)
    pf = jnp.concatenate([pf4, pf3], axis=1) * inv_hw                 # (K+1, C) f32

    # 5) modulation, mean over foreground landmarks, attr / class heads (tiny, f32).
    # TODO(synk): Dropout1d over landmarks is train-only; identity in eval forward.
    modulated = pf * mod_ref[...]                                     # (K+1, C)
    mf = jnp.mean(modulated[:K, :], axis=0, keepdims=True)            # (1, C)

    attr = jax.lax.dot_general(mf, wattr_ref[...], (((1,), (1,)), ((), ())),
                               preferred_element_type=jnp.float32) + battr_ref[...]   # (1, A)
    cls = jax.lax.dot_general(attr, wcls_ref[...], (((1,), (1,)), ((), ())),
                              preferred_element_type=jnp.float32)     # (1, NC)

    attr_ref[0] = attr
    cls_ref[0] = cls
    maps_ref[0] = maps
    pf_ref[0] = pf


def pdn_forward(l3, l4, params):
    """JAX/Pallas equivalent of PDN.forward, post-backbone.

    l3: (B, C3, H, W) backbone layer3 features.
    l4: (B, C4, H4, W4) backbone layer4 features.
    Returns the same dict as the PyTorch module:
      attr_scores (B, A), class_scores (B, NC),
      attn_maps (B, K+1, H, W), part_features (B, C, K+1).
    """
    B, C3, H, W = l3.shape
    _, C4, H4, W4 = l4.shape
    C = C4 + C3
    HW, HW4 = H * W, H4 * W4

    wl_f32 = params["fc_landmarks_w"].astype(jnp.float32)             # (K+1, C)
    K1 = wl_f32.shape[0]
    K = K1 - 1
    # a_sq is batch-independent -> hoisted out of the per-batch grid loop.
    # (Matches torch: fc_landmarks.weight.sum(1), NOT a sum of squares.)
    a_sq = jnp.sum(wl_f32, axis=1, keepdims=True)                     # (K+1, 1)
    modT = jnp.transpose(params["modulation"][0], (1, 0)).astype(jnp.float32)  # (K+1, C)
    wattr = params["fc_attrs_w"].astype(jnp.float32)                  # (A, C)
    battr = params["fc_attrs_b"].astype(jnp.float32).reshape(1, -1)   # (1, A)
    wcls = params["fc_classes_w"].astype(jnp.float32)                 # (NC, A)
    A, NC = wattr.shape[0], wcls.shape[0]

    # Exact torch bilinear (align_corners=False) upsample as one matrix; bf16
    # MXU operand (accumulation is f32 inside the kernel).
    # TODO(synk): if MXU-bound at production sizes, switch to the separable
    # (W-matmul, einshape transpose, H-matmul) form (~9x fewer upsample FLOPs).
    up_mat = jnp.asarray(
        np.kron(_bilinear_matrix(H, H4), _bilinear_matrix(W, W4)).T,
        dtype=jnp.bfloat16)                                           # (H4*W4, H*W)

    # Lane-dense layouts: flatten spatial onto the last (lane) axis.  bf16
    # operands halve HBM->VMEM traffic and run the MXU at native throughput.
    l4f = l4.reshape(B, C4, HW4).astype(jnp.bfloat16)
    l3f = l3.reshape(B, C3, HW).astype(jnp.bfloat16)
    wl_b = wl_f32.astype(jnp.bfloat16)

    kernel = functools.partial(_pdn_head_kernel, num_landmarks=K, c4=C4, hw=HW)

    flops = 2 * B * (C4 * HW4 * HW + 2 * K1 * C * HW + A * C + NC * A)
    transcendentals = B * (K1 + 1) * HW
    bytes_accessed = (2 * (l4f.size + l3f.size + up_mat.size + wl_b.size)
                      + 4 * (a_sq.size + modT.size + wattr.size + battr.size + wcls.size
                             + B * (A + NC + K1 * HW + K1 * C)))

    out_shapes = (
        jax.ShapeDtypeStruct((B, 1, A), jnp.float32),     # attr_scores
        jax.ShapeDtypeStruct((B, 1, NC), jnp.float32),    # class_scores
        jax.ShapeDtypeStruct((B, K1, HW), jnp.float32),   # attn_maps (flat spatial)
        jax.ShapeDtypeStruct((B, K1, C), jnp.float32),    # part_features (landmark-major)
    )
    in_specs = [
        pl.BlockSpec((1, C4, HW4), lambda b: (b, 0, 0)),
        pl.BlockSpec((1, C3, HW), lambda b: (b, 0, 0)),
        pl.BlockSpec((HW4, HW), lambda b: (0, 0)),
        pl.BlockSpec((K1, C), lambda b: (0, 0)),
        pl.BlockSpec((K1, 1), lambda b: (0, 0)),
        pl.BlockSpec((K1, C), lambda b: (0, 0)),
        pl.BlockSpec((A, C), lambda b: (0, 0)),
        pl.BlockSpec((1, A), lambda b: (0, 0)),
        pl.BlockSpec((NC, A), lambda b: (0, 0)),
    ]
    out_specs = (
        pl.BlockSpec((1, 1, A), lambda b: (b, 0, 0)),
        pl.BlockSpec((1, 1, NC), lambda b: (b, 0, 0)),
        pl.BlockSpec((1, K1, HW), lambda b: (b, 0, 0)),
        pl.BlockSpec((1, K1, C), lambda b: (b, 0, 0)),
    )

    attr3, cls3, maps_flat, pf_kc = pl.pallas_call(
        kernel,
        out_shape=out_shapes,
        grid=(B,),
        in_specs=in_specs,
        out_specs=out_specs,
        scratch_shapes=[pltpu.VMEM((C4, HW), jnp.bfloat16)],
        compiler_params=pltpu.CompilerParams(
            dimension_semantics=("parallel",),
            # 48 MiB: above the 16/32 MiB scoped defaults, still inside v7x's
            # 64 MiB physical VMEM; v5e/v6e (128 MiB) can go higher at
            # production (ResNet-size) shapes.
            vmem_limit_bytes=48 * 1024 * 1024),
        cost_estimate=pl.CostEstimate(flops=flops,
                                      transcendentals=transcendentals,
                                      bytes_accessed=bytes_accessed),
    )(l4f, l3f, up_mat, wl_b, a_sq, modT, wattr, battr, wcls)

    return {
        "attr_scores": attr3.reshape(B, A),
        "class_scores": cls3.reshape(B, NC),
        "attn_maps": maps_flat.reshape(B, K1, H, W),
        "part_features": jnp.transpose(pf_kc, (0, 2, 1)),  # (B, C, K+1) torch layout
    }


def _ref_forward(l3, l4, params, num_landmarks):
    """Pure-JAX f32 reference of PDN.forward (post-backbone), for verification."""
    B, C3, H, W = l3.shape
    H4, W4 = l4.shape[2], l4.shape[3]
    K = num_landmarks
    Uh = jnp.asarray(_bilinear_matrix(H, H4))
    Uw = jnp.asarray(_bilinear_matrix(W, W4))
    up = jnp.einsum("Hh,bchw,Ww->bcHW", Uh, l4, Uw)
    x = jnp.concatenate([up, l3], axis=1)                             # (B, C, H, W)
    wl = params["fc_landmarks_w"]
    ab = jnp.einsum("kc,bchw->bkhw", wl, x)
    b_sq = jnp.sum(x * x, axis=1, keepdims=True)
    a_sq = jnp.sum(wl, axis=1)[None, :, None, None]
    maps = jax.nn.softmax(-(b_sq - 2.0 * ab + a_sq), axis=1)          # (B, K+1, H, W)
    all_features = jnp.einsum("bkhw,bchw->bck", maps, x) / (H * W)    # (B, C, K+1)
    modulated = all_features * params["modulation"]
    mean_features = jnp.mean(jnp.transpose(modulated, (0, 2, 1))[:, :K, :], axis=1)
    attr = mean_features @ params["fc_attrs_w"].T + params["fc_attrs_b"]
    cls = attr @ params["fc_classes_w"].T
    return {"attr_scores": attr, "class_scores": cls,
            "attn_maps": maps, "part_features": all_features}


if __name__ == "__main__":
    key = jax.random.PRNGKey(0)
    B = 2
    num_landmarks = 8                  # K (module default)
    K1 = num_landmarks + 1
    C3, C4 = 64, 128                   # scaled-down stand-ins for ResNet's 1024 / 2048
    C = C3 + C4
    H = W = 16                         # layer3 spatial size
    H4 = W4 = 8                        # layer4 spatial size (stride-2 of layer3)
    num_attrs = 32
    num_classes = 16

    ks = jax.random.split(key, 7)
    l3 = 0.1 * jax.random.normal(ks[0], (B, C3, H, W), jnp.float32)
    l4 = 0.1 * jax.random.normal(ks[1], (B, C4, H4, W4), jnp.float32)
    params = {
        "fc_landmarks_w": 0.1 * jax.random.normal(ks[2], (K1, C), jnp.float32),
        "modulation": 1.0 + 0.1 * jax.random.normal(ks[3], (1, C, K1), jnp.float32),
        "fc_attrs_w": 0.1 * jax.random.normal(ks[4], (num_attrs, C), jnp.float32),
        "fc_attrs_b": 0.1 * jax.random.normal(ks[5], (num_attrs,), jnp.float32),
        "fc_classes_w": 0.1 * jax.random.normal(ks[6], (num_classes, num_attrs), jnp.float32),
    }

    out = pdn_forward(l3, l4, params)
    jax.block_until_ready(out)

    ref = _ref_forward(l3, l4, params, num_landmarks)
    for name in ("attr_scores", "class_scores", "attn_maps", "part_features"):
        assert out[name].shape == ref[name].shape, name
        assert bool(jnp.allclose(out[name], ref[name], rtol=1e-2, atol=1e-2)), name

    print("KERNEL_OK")
</pallas_src>

<mosaic_0001>
module attributes {stable_mosaic.version = 11 : i64} {
  func.func @_pdn_head_kernel(%arg0: i32, %arg1: memref<1x128x64xbf16, #tpu.memory_space<vmem>>, %arg2: memref<1x64x256xbf16, #tpu.memory_space<vmem>>, %arg3: memref<64x256xbf16, #tpu.memory_space<vmem>>, %arg4: memref<9x192xbf16, #tpu.memory_space<vmem>>, %arg5: memref<9x1xf32, #tpu.memory_space<vmem>>, %arg6: memref<9x192xf32, #tpu.memory_space<vmem>>, %arg7: memref<32x192xf32, #tpu.memory_space<vmem>>, %arg8: memref<1x32xf32, #tpu.memory_space<vmem>>, %arg9: memref<16x32xf32, #tpu.memory_space<vmem>>, %arg10: memref<1x1x32xf32, #tpu.memory_space<vmem>>, %arg11: memref<1x1x16xf32, #tpu.memory_space<vmem>>, %arg12: memref<1x9x256xf32, #tpu.memory_space<vmem>>, %arg13: memref<1x9x192xf32, #tpu.memory_space<vmem>>, %arg14: memref<128x256xbf16, #tpu.memory_space<vmem>>) attributes {dimension_semantics = [#tpu.dimension_semantics<parallel>], iteration_bounds = array<i64: 2>, scalar_prefetch = 0 : i64, scratch_operands = 1 : i64, tpu.core_type = #tpu.core_type<tc>, window_params = [{transform_indices = @transform_0, window_bounds = array<i64: 1, 128, 64>}, {transform_indices = @transform_1, window_bounds = array<i64: 1, 64, 256>}, {pipeline_mode = #tpu.pipeline_mode<synchronous>, transform_indices = @transform_2, window_bounds = array<i64: 64, 256>}, {pipeline_mode = #tpu.pipeline_mode<synchronous>, transform_indices = @transform_3, window_bounds = array<i64: 9, 192>}, {pipeline_mode = #tpu.pipeline_mode<synchronous>, transform_indices = @transform_4, window_bounds = array<i64: 9, 1>}, {pipeline_mode = #tpu.pipeline_mode<synchronous>, transform_indices = @transform_5, window_bounds = array<i64: 9, 192>}, {pipeline_mode = #tpu.pipeline_mode<synchronous>, transform_indices = @transform_6, window_bounds = array<i64: 32, 192>}, {pipeline_mode = #tpu.pipeline_mode<synchronous>, transform_indices = @transform_7, window_bounds = array<i64: 1, 32>}, {pipeline_mode = #tpu.pipeline_mode<synchronous>, transform_indices = @transform_8, window_bounds = array<i64: 16, 32>}, {transform_indices = @transform_9, window_bounds = array<i64: 1, 1, 32>}, {transform_indices = @transform_10, window_bounds = array<i64: 1, 1, 16>}, {transform_indices = @transform_11, window_bounds = array<i64: 1, 9, 256>}, {transform_indices = @transform_12, window_bounds = array<i64: 1, 9, 192>}]} {
    %c0 = arith.constant 0 : index
    %c0_0 = arith.constant 0 : index
    %c0_1 = arith.constant 0 : index
    %0 = vector.load %arg1[%c0, %c0_0, %c0_1] : memref<1x128x64xbf16, #tpu.memory_space<vmem>>, vector<1x128x64xbf16>
    %1 = vector.shape_cast %0 : vector<1x128x64xbf16> to vector<128x64xbf16>
    %c0_2 = arith.constant 0 : index
    %c0_3 = arith.constant 0 : index
    %2 = vector.load %arg3[%c0_2, %c0_3] : memref<64x256xbf16, #tpu.memory_space<vmem>>, vector<64x256xbf16>
    %cst = arith.constant dense<0.000000e+00> : vector<128x256xf32>
    %3 = tpu.matmul %1, %2, %cst {dimension_numbers = #tpu.dot_dimension_numbers<[1], [0], [0], [1], [0, 0, 1, 1], [], []>} : vector<128x64xbf16>, vector<64x256xbf16>, vector<128x256xf32> -> vector<128x256xf32>
    %4 = arith.truncf %3 : vector<128x256xf32> to vector<128x256xbf16>
    %c0_4 = arith.constant 0 : index
    %c0_5 = arith.constant 0 : index
    %5 = vector.load %arg14[%c0_4, %c0_5] : memref<128x256xbf16, #tpu.memory_space<vmem>>, vector<128x256xbf16>
    tpu.vector_store %arg14[%c0_4, %c0_5], %4 {strides = array<i32>} : memref<128x256xbf16, #tpu.memory_space<vmem>>, vector<128x256xbf16>,
    %c0_6 = arith.constant 0 : index
    %c0_7 = arith.constant 0 : index
    %6 = vector.load %arg14[%c0_6, %c0_7] : memref<128x256xbf16, #tpu.memory_space<vmem>>, vector<128x256xbf16>
    %c0_8 = arith.constant 0 : index
    %c0_9 = arith.constant 0 : index
    %c0_10 = arith.constant 0 : index
    %7 = vector.load %arg2[%c0_8, %c0_9, %c0_10] : memref<1x64x256xbf16, #tpu.memory_space<vmem>>, vector<1x64x256xbf16>
    %8 = vector.shape_cast %7 : vector<1x64x256xbf16> to vector<64x256xbf16>
    %c0_11 = arith.constant 0 : index
    %c0_12 = arith.constant 0 : index
    %9 = vector.load %arg4[%c0_11, %c0_12] : memref<9x192xbf16, #tpu.memory_space<vmem>>, vector<9x128xbf16>
    %cst_13 = arith.constant dense<0.000000e+00> : vector<9x256xf32>
    %10 = tpu.matmul %9, %6, %cst_13 {dimension_numbers = #tpu.dot_dimension_numbers<[1], [0], [0], [1], [0, 0, 1, 1], [], []>} : vector<9x128xbf16>, vector<128x256xbf16>, vector<9x256xf32> -> vector<9x256xf32>
    %c0_14 = arith.constant 0 : index
    %c128 = arith.constant 128 : index
    %11 = vector.load %arg4[%c0_14, %c128] : memref<9x192xbf16, #tpu.memory_space<vmem>>, vector<9x64xbf16>
    %cst_15 = arith.constant dense<0.000000e+00> : vector<9x256xf32>
    %12 = tpu.matmul %11, %8, %cst_15 {dimension_numbers = #tpu.dot_dimension_numbers<[1], [0], [0], [1], [0, 0, 1, 1], [], []>} : vector<9x64xbf16>, vector<64x256xbf16>, vector<9x256xf32> -> vector<9x256xf32>
    %13 = arith.addf %10, %12 : vector<9x256xf32>
    %cst_16 = arith.constant 2.000000e+00 : f32
    %14 = vector.broadcast %cst_16 : f32 to vector<9x256xf32>
    %15 = arith.mulf %14, %13 : vector<9x256xf32>
    %c0_17 = arith.constant 0 : index
    %c0_18 = arith.constant 0 : index
    %16 = vector.load %arg5[%c0_17, %c0_18] : memref<9x1xf32, #tpu.memory_space<vmem>>, vector<9x1xf32>
    %17 = vector.broadcast %16 : vector<9x1xf32> to vector<9x256xf32>
    %18 = arith.subf %15, %17 : vector<9x256xf32>
    %cst_19 = arith.constant dense<0xFF800000> : vector<256xf32>
    %19 = vector.multi_reduction <maximumf>, %18, %cst_19 [0] : vector<9x256xf32> to vector<256xf32>
    %20 = vector.shape_cast %19 : vector<256xf32> to vector<1x256xf32>
    %21 = vector.broadcast %20 : vector<1x256xf32> to vector<9x256xf32>
    %22 = arith.subf %18, %21 : vector<9x256xf32>
    %23 = math.exp %22 : vector<9x256xf32>
    %cst_20 = arith.constant dense<0.000000e+00> : vector<256xf32>
    %24 = vector.multi_reduction <add>, %23, %cst_20 [0] : vector<9x256xf32> to vector<256xf32>
    %25 = vector.shape_cast %24 : vector<256xf32> to vector<1x256xf32>
    %26 = tpu.reciprocal %25 {approx = true} : vector<1x256xf32> -> vector<1x256xf32>
    %27 = vector.broadcast %26 : vector<1x256xf32> to vector<9x256xf32>
    %28 = arith.mulf %23, %27 : vector<9x256xf32>
    %29 = arith.truncf %28 : vector<9x256xf32> to vector<9x256xbf16>
    %cst_21 = arith.constant dense<0.000000e+00> : vector<9x128xf32>
    %30 = tpu.matmul %29, %6, %cst_21 {dimension_numbers = #tpu.dot_dimension_numbers<[1], [1], [0], [0], [0, 0, 1, 0], [], []>} : vector<9x256xbf16>, vector<128x256xbf16>, vector<9x128xf32> -> vector<9x128xf32>
    %cst_22 = arith.constant dense<0.000000e+00> : vector<9x64xf32>
    %31 = tpu.matmul %29, %8, %cst_22 {dimension_numbers = #tpu.dot_dimension_numbers<[1], [1], [0], [0], [0, 0, 1, 0], [], []>} : vector<9x256xbf16>, vector<64x256xbf16>, vector<9x64xf32> -> vector<9x64xf32>
    %32 = tpu.concatenate %30, %31 in 1 : vector<9x128xf32>, vector<9x64xf32> -> vector<9x192xf32>
    %cst_23 = arith.constant 3.906250e-03 : f32
    %33 = vector.broadcast %cst_23 : f32 to vector<9x192xf32>
    %34 = arith.mulf %32, %33 : vector<9x192xf32>
    %c0_24 = arith.constant 0 : index
    %c0_25 = arith.constant 0 : index
    %35 = vector.load %arg6[%c0_24, %c0_25] : memref<9x192xf32, #tpu.memory_space<vmem>>, vector<9x192xf32>
    %36 = arith.mulf %34, %35 : vector<9x192xf32>
    %37 = vector.extract_strided_slice %36 {offsets = [0, 0], sizes = [8, 192], strides = [1, 1]} : vector<9x192xf32> to vector<8x192xf32>
    %cst_26 = arith.constant dense<0.000000e+00> : vector<192xf32>
    %38 = vector.multi_reduction <add>, %37, %cst_26 [0] : vector<8x192xf32> to vector<192xf32>
    %39 = vector.shape_cast %38 : vector<192xf32> to vector<1x192xf32>
    %cst_27 = arith.constant 8.000000e+00 : f32
    %40 = vector.broadcast %cst_27 : f32 to vector<1x192xf32>
    %41 = arith.divf %39, %40 : vector<1x192xf32>
    %c0_28 = arith.constant 0 : index
    %c0_29 = arith.constant 0 : index
    %42 = vector.load %arg7[%c0_28, %c0_29] : memref<32x192xf32, #tpu.memory_space<vmem>>, vector<32x192xf32>
    %cst_30 = arith.constant dense<0.000000e+00> : vector<1x32xf32>
    %43 = tpu.matmul %41, %42, %cst_30 {dimension_numbers = #tpu.dot_dimension_numbers<[1], [1], [0], [0], [0, 0, 1, 0], [], []>} : vector<1x192xf32>, vector<32x192xf32>, vector<1x32xf32> -> vector<1x32xf32>
    %c0_31 = arith.constant 0 : index
    %c0_32 = arith.constant 0 : index
    %44 = vector.load %arg8[%c0_31, %c0_32] : memref<1x32xf32, #tpu.memory_space<vmem>>, vector<1x32xf32>
    %45 = arith.addf %43, %44 : vector<1x32xf32>
    %c0_33 = arith.constant 0 : index
    %c0_34 = arith.constant 0 : index
    %46 = vector.load %arg9[%c0_33, %c0_34] : memref<16x32xf32, #tpu.memory_space<vmem>>, vector<16x32xf32>
    %cst_35 = arith.constant dense<0.000000e+00> : vector<1x16xf32>
    %47 = tpu.matmul %45, %46, %cst_35 {dimension_numbers = #tpu.dot_dimension_numbers<[1], [1], [0], [0], [0, 0, 1, 0], [], []>} : vector<1x32xf32>, vector<16x32xf32>, vector<1x16xf32> -> vector<1x16xf32>
    %c0_36 = arith.constant 0 : index
    %c0_37 = arith.constant 0 : index
    %c0_38 = arith.constant 0 : index
    %48 = vector.load %arg10[%c0_36, %c0_37, %c0_38] : memref<1x1x32xf32, #tpu.memory_space<vmem>>, vector<1x1x32xf32>
    %49 = vector.shape_cast %48 : vector<1x1x32xf32> to vector<1x32xf32>
    %50 = vector.shape_cast %45 : vector<1x32xf32> to vector<1x1x32xf32>
    tpu.vector_store %arg10[%c0_36, %c0_37, %c0_38], %50 {strides = array<i32>} : memref<1x1x32xf32, #tpu.memory_space<vmem>>, vector<1x1x32xf32>,
    %c0_39 = arith.constant 0 : index
    %c0_40 = arith.constant 0 : index
    %c0_41 = arith.constant 0 : index
    %51 = vector.load %arg11[%c0_39, %c0_40, %c0_41] : memref<1x1x16xf32, #tpu.memory_space<vmem>>, vector<1x1x16xf32>
    %52 = vector.shape_cast %51 : vector<1x1x16xf32> to vector<1x16xf32>
    %53 = vector.shape_cast %47 : vector<1x16xf32> to vector<1x1x16xf32>
    tpu.vector_store %arg11[%c0_39, %c0_40, %c0_41], %53 {strides = array<i32>} : memref<1x1x16xf32, #tpu.memory_space<vmem>>, vector<1x1x16xf32>,
    %c0_42 = arith.constant 0 : index
    %c0_43 = arith.constant 0 : index
    %c0_44 = arith.constant 0 : index
    %54 = vector.load %arg12[%c0_42, %c0_43, %c0_44] : memref<1x9x256xf32, #tpu.memory_space<vmem>>, vector<1x9x256xf32>
    %55 = vector.shape_cast %54 : vector<1x9x256xf32> to vector<9x256xf32>
    %56 = vector.shape_cast %28 : vector<9x256xf32> to vector<1x9x256xf32>
    tpu.vector_store %arg12[%c0_42, %c0_43, %c0_44], %56 {strides = array<i32>} : memref<1x9x256xf32, #tpu.memory_space<vmem>>, vector<1x9x256xf32>,
    %c0_45 = arith.constant 0 : index
    %c0_46 = arith.constant 0 : index
    %c0_47 = arith.constant 0 : index
    %57 = vector.load %arg13[%c0_45, %c0_46, %c0_47] : memref<1x9x192xf32, #tpu.memory_space<vmem>>, vector<1x9x192xf32>
    %58 = vector.shape_cast %57 : vector<1x9x192xf32> to vector<9x192xf32>
    %59 = vector.shape_cast %34 : vector<9x192xf32> to vector<1x9x192xf32>
    tpu.vector_store %arg13[%c0_45, %c0_46, %c0_47], %59 {strides = array<i32>} : memref<1x9x192xf32, #tpu.memory_space<vmem>>, vector<1x9x192xf32>,
    return
  }
  func.func @transform_0(%arg0: i32) -> (i32, i32, i32) {
    %c0_i32 = arith.constant 0 : i32
    %c0_i32_0 = arith.constant 0 : i32
    %c0_i32_1 = arith.constant 0 : i32
    return %arg0, %c0_i32, %c0_i32_0 : i32, i32, i32
  }
  func.func @transform_1(%arg0: i32) -> (i32, i32, i32) {
    %c0_i32 = arith.constant 0 : i32
    %c0_i32_0 = arith.constant 0 : i32
    %c0_i32_1 = arith.constant 0 : i32
    return %arg0, %c0_i32, %c0_i32_0 : i32, i32, i32
  }
  func.func @transform_2(%arg0: i32) -> (i32, i32) {
    %c0_i32 = arith.constant 0 : i32
    %c0_i32_0 = arith.constant 0 : i32
    %c0_i32_1 = arith.constant 0 : i32
    return %c0_i32, %c0_i32_0 : i32, i32
  }
  func.func @transform_3(%arg0: i32) -> (i32, i32) {
    %c0_i32 = arith.constant 0 : i32
    %c0_i32_0 = arith.constant 0 : i32
    %c0_i32_1 = arith.constant 0 : i32
    return %c0_i32, %c0_i32_0 : i32, i32
  }
  func.func @transform_4(%arg0: i32) -> (i32, i32) {
    %c0_i32 = arith.constant 0 : i32
    %c0_i32_0 = arith.constant 0 : i32
    %c0_i32_1 = arith.constant 0 : i32
    return %c0_i32, %c0_i32_0 : i32, i32
  }
  func.func @transform_5(%arg0: i32) -> (i32, i32) {
    %c0_i32 = arith.constant 0 : i32
    %c0_i32_0 = arith.constant 0 : i32
    %c0_i32_1 = arith.constant 0 : i32
    return %c0_i32, %c0_i32_0 : i32, i32
  }
  func.func @transform_6(%arg0: i32) -> (i32, i32) {
    %c0_i32 = arith.constant 0 : i32
    %c0_i32_0 = arith.constant 0 : i32
    %c0_i32_1 = arith.constant 0 : i32
    return %c0_i32, %c0_i32_0 : i32, i32
  }
  func.func @transform_7(%arg0: i32) -> (i32, i32) {
    %c0_i32 = arith.constant 0 : i32
    %c0_i32_0 = arith.constant 0 : i32
    %c0_i32_1 = arith.constant 0 : i32
    return %c0_i32, %c0_i32_0 : i32, i32
  }
  func.func @transform_8(%arg0: i32) -> (i32, i32) {
    %c0_i32 = arith.constant 0 : i32
    %c0_i32_0 = arith.constant 0 : i32
    %c0_i32_1 = arith.constant 0 : i32
    return %c0_i32, %c0_i32_0 : i32, i32
  }
  func.func @transform_9(%arg0: i32) -> (i32, i32, i32) {
    %c0_i32 = arith.constant 0 : i32
    %c0_i32_0 = arith.constant 0 : i32
    %c0_i32_1 = arith.constant 0 : i32
    return %arg0, %c0_i32, %c0_i32_0 : i32, i32, i32
  }
  func.func @transform_10(%arg0: i32) -> (i32, i32, i32) {
    %c0_i32 = arith.constant 0 : i32
    %c0_i32_0 = arith.constant 0 : i32
    %c0_i32_1 = arith.constant 0 : i32
    return %arg0, %c0_i32, %c0_i32_0 : i32, i32, i32
  }
  func.func @transform_11(%arg0: i32) -> (i32, i32, i32) {
    %c0_i32 = arith.constant 0 : i32
    %c0_i32_0 = arith.constant 0 : i32
    %c0_i32_1 = arith.constant 0 : i32
    return %arg0, %c0_i32, %c0_i32_0 : i32, i32, i32
  }
  func.func @transform_12(%arg0: i32) -> (i32, i32, i32) {
    %c0_i32 = arith.constant 0 : i32
    %c0_i32_0 = arith.constant 0 : i32
    %c0_i32_1 = arith.constant 0 : i32
    return %arg0, %c0_i32, %c0_i32_0 : i32, i32, i32
  }
}

</mosaic_0001>

<bundles_post_ra>
// kernel: tpu_custom_call.1
= control target key start
LH: loop header
LB: loop body
LE: loop exit
PB: predicated region body
PF: predicated region fallthrough
CT: control target
= control target key end

     0   :  { %s2397_s0 = inlined_call_operand.vmem [shape: bf16[2,128,64], index: 0, kind: input, shape index: {}]   ;;  %s2398_s1 = inlined_call_operand.vmem [shape: bf16[2,64,256], index: 1, kind: input, shape index: {}]   ;;  %s2399_s2 = inlined_call_operand.vmem [shape: bf16[64,256], index: 2, kind: input, shape index: {}]   ;;  %s2400_s3 = inlined_call_operand.hbm [shape: bf16[9,192], index: 3, kind: input, shape index: {}]   ;;  %s2401_s4 = inlined_call_operand.vmem [shape: f32[9,1], index: 4, kind: input, shape index: {}]   ;;  %s2402_s5 = inlined_call_operand.vmem [shape: f32[9,192], index: 5, kind: input, shape index: {}]   ;;  %s2403_s6 = inlined_call_operand.hbm [shape: f32[32,192], index: 6, kind: input, shape index: {}]   ;;  %s2404_s7 = inlined_call_operand.vmem [shape: f32[1,32], index: 7, kind: input, shape index: {}]   ;;  %s2405_s8 = inlined_call_operand.hbm [shape: f32[16,32], index: 8, kind: input, shape index: {}]   ;;  %s2406_s9 = inlined_call_operand.hbm [shape: f32[2,1,32], index: 9, kind: output, shape index: {0}]   ;;  %s2407_s10 = inlined_call_operand.hbm [shape: f32[2,1,16], index: 10, kind: output, shape index: {1}]   ;;  %s2408_s11 = inlined_call_operand.vmem [shape: f32[2,9,256], index: 11, kind: output, shape index: {2}]   ;;  %s2409_s12 = inlined_call_operand.vmem [shape: f32[2,9,192], index: 12, kind: output, shape index: {3}]  }
   0x1   :  { %2420 = sst [smem:[#allocation22_spill]] %s2403_s6 }
   0x2   :  { %2421 = sst [smem:[#allocation23_spill]] %s2407_s10 }
   0x3   :  { %18 = vsyncpa [#allocation4], 0 }
   0x4   :  { %19 = vsyncpa [#allocation7], 0 }
   0x5   :  { %20 = vsyncpa [#allocation5], 0 }
   0x6   :  { %22 = vsyncpa [#allocation5 + $0x1], 0 }
   0x7   :  { %23 = vsyncpa [#allocation11], 0 }
   0x8   :  { %25 = vsyncpa [#allocation11 + $0x1], 0  ;;  %s2035_s21 = smov 0   ;;  %s2037_s22 = smov 0  }
   0x9   :  { %s2039_s23 = smov 0   ;;  %s2041_s24 = smov 0  }
   0xa LB: > { %2422 = sst [smem:[#allocation16_spill]] %s1943_s21  ;;  %s2056_s25 = sadd.s32 4294967295, %s1955_s24   ;;  %s1955_s24 = sphi %s2041_s24, %s2445_s24   ;;  %s1951_s23 = sphi %s2039_s23, %s2447_s23   ;;  %s1947_s22 = sphi %s2037_s22, %s2449_s22   ;;  %s1943_s21 = sphi %s2035_s21, %s2448_s21  }
   0xb   : > { %2423 = sst [smem:[#allocation17_spill]] %s1951_s23  ;;  %s1542_s26 = sadd.s32 4294967294, %s1955_s24  }
   0xc   : > { %2424 = sst [smem:[#allocation18_spill]] %s1955_s24  ;;  %s2060_s27 = sadd.s32 1, %s1955_s24  }
   0xd   : > { %2425 = sst [smem:[#allocation19_spill]] %s2060_s27  ;;  %s237_s28 = sadd.s32 1, %s1951_s23 }
   0xe   : > { %s234_s29 = ssub.s32 %s1955_s24, %s2060_s27  ;;  %p247_p0 = scmp.ne.s32.totalorder %s1951_s23, %s1947_s22 }
   0xf   : > { %p235_p1 = scmp.eq.s32.totalorder %s234_s29, 0  ;;  %p248_p2 = scmp.eq.s32.totalorder %s2056_s25, 1 }
  0x10   : > { %p253_p3 = scmp.ne.s32.totalorder %s1947_s22, %s1943_s21  ;;  %p254_p4 = scmp.eq.s32.totalorder %s1542_s26, 1 }
  0x11   : > { %s2071_s30 = scalar_select %p235_p1, %s1951_s23, %s237_s28  }
  0x12   : > { %p2073_p5 = por %p248_p2, %p247_p0  ;;  %p2077_p6 = por %p254_p4, %p253_p3 }
  0x13   : > { %2426 = sst [smem:[#allocation20_spill]] %s2071_s30  ;;  %p1543_p7 = scmp.ge.s32.totalorder %s1955_s24, 1 }
  0x14   : > { %s2427_s13 = scalar_select %p2073_p5, 1, 0 }
  0x15   : > { %s2428_s14 = scalar_select %p2077_p6, 1, 0 }
  0x16   : > { %p339_p8 = scmp.lt.s32.totalorder %s1955_s24, 3  ;;  %p2413_p9 = scmp.eq.s32.totalorder %s2056_s25, 0 }
  0x17   : > { %2429 = sst [smem:[#allocation21_spill]] %s2428_s14  ;;  %s1957_s16 = smov [#allocation6]  }
  0x18   : > { %p2084_p10 = pnand %p1543_p7, %p339_p8  ;;  %s373_s17 = sshll.u32 %s1957_s16, 4  ;;  %s374_s17 = int_to_ptr.vmem [resolvable:$true] %s373_s17 }
  0x19   : > { %s1958_s19 = smov [#allocation3]   ;;  %s2432_s6 = sld [smem:[#allocation22_spill]] }
  0x1a   : > { %s2430_s15 = scalar_select %p2084_p10, 1, 0 }
  0x1b   : > { %p1655_p11 = pneg %p2084_p10  ;;  %s354_s20 = sshll.u32 %s1958_s19, 4  ;;  %s2096_s20 = int_to_ptr.vmem [resolvable:$true] %s354_s20 }
  0x1d   : > { %p2092_p12 = pnand %p2413_p9, %p1655_p11 }
  0x1f   : > { %s1769_s29 = scalar_lea.hbm %s2432_s6, 1024  ;;  %p2106_p0 = pneg %p2092_p12 }
  0x20   : > { %p1770_p13 = scmp.ne.s32.totalorder %s2432_s6, %s1769_s29  ;;  %p1776_p3 = scmp.lt.u32.totalorder %s1769_s29, %s2432_s6 }
  0x22   : > { %p1772_p1 = pnand %p2106_p0, %p1770_p13 }
  0x24   : > { %p1773_p2 = pneg %p1772_p1 }
  0x26   : > { %p1778_p4 = pnand %p1776_p3, %p1773_p2 }
  0x28   : > { %1781 = shalt.err (!%p1778_p4)
}
  0x29   : > { %s1782_s26 = scalar_lea.vmem %s374_s17, 1024  ;;  %p1790_p9 = scmp.lt.s32.totalorder %s374_s17, %s374_s17 }
  0x2a   : > { %p1783_p7 = scmp.ne.s32.totalorder %s374_s17, %s1782_s26  ;;  %p1791_p6 = scmp.lt.s32.totalorder %s1782_s26, %s1782_s26 }
  0x2c   : > { %p1785_p8 = pnand %p1783_p7, %p2106_p0  ;;  %p1792_p5 = por %p1791_p6, %p1790_p9 }
  0x2e   : > { %p1786_p11 = pneg %p1785_p8 }
  0x30   : > { %p1793_p10 = pnand %p1792_p5, %p1786_p11 }
  0x32   : > { %1796 = shalt.err (!%p1793_p10)
}
  0x33   : > { %s1959_s23 = smov 256   ;;  %s1960_s30 = smov 16  }
  0x34   : > { %1661 = dma.hbm_to_vmem [thread:$0]  (!%p2092_p12), %s2432_s6, 1024, %s374_s17, [#allocation7], %s1959_s23, %s1959_s23, %s1960_s30  }
  0x35   : > { %s1797_s14 = scalar_lea.hbm %s2400_s3, 256 }
  0x36   : > { %p1798_p13 = scmp.ne.s32.totalorder %s2400_s3, %s1797_s14  ;;  %p1804_p9 = scmp.lt.u32.totalorder %s1797_s14, %s2400_s3 }
  0x38   : > { %p1800_p5 = pnand %p1798_p13, %p2106_p0 }
  0x3a   : > { %p1801_p6 = pneg %p1800_p5 }
  0x3c   : > { %p1806_p10 = pnand %p1804_p9, %p1801_p6 }
  0x3e   : > { %1809 = shalt.err (!%p1806_p10)
}
  0x3f   : > { %s1810_s17 = scalar_lea.vmem %s2096_s20, 256  ;;  %p1818_p4 = scmp.lt.s32.totalorder %s2096_s20, %s2096_s20 }
  0x40   : > { %p1811_p1 = scmp.ne.s32.totalorder %s2096_s20, %s1810_s17  ;;  %p1819_p7 = scmp.lt.s32.totalorder %s1810_s17, %s1810_s17 }
  0x42   : > { %p1813_p2 = pnand %p1811_p1, %p2106_p0  ;;  %p1820_p8 = por %p1819_p7, %p1818_p4 }
  0x44   : > { %p1814_p3 = pneg %p1813_p2 }
  0x46   : > { %p1821_p11 = pnand %p1820_p8, %p1814_p3 }
  0x48   : > { %1824 = shalt.err (!%p1821_p11)
}
  0x49   : > { %s1961_s21 = smov 128   ;;  %s1962_s10 = smov 8  }
  0x4a   : > { %1658 = dma.hbm_to_vmem [thread:$0]  (!%p2092_p12), %s2400_s3, 256, %s2096_s20, [#allocation4], %s1961_s21, %s1961_s21, %s1962_s10  }
  0x4b   : > { %s1963_s23 = smov [#allocation8]   ;;  %s1825_s29 = scalar_lea.hbm %s2405_s8, 256 }
  0x4c   : > { %s389_s30 = sshll.u32 %s1963_s23, 4  ;;  %p1826_p13 = scmp.ne.s32.totalorder %s2405_s8, %s1825_s29  ;;  %s390_s30 = int_to_ptr.vmem [resolvable:$true] %s389_s30 }
  0x4d   : > { %p1832_p9 = scmp.lt.u32.totalorder %s1825_s29, %s2405_s8 }
  0x4e   : > { %p1828_p5 = pnand %p1826_p13, %p2106_p0 }
  0x50   : > { %p1829_p6 = pneg %p1828_p5 }
  0x52   : > { %p1834_p10 = pnand %p1832_p9, %p1829_p6 }
  0x54   : > { %1837 = shalt.err (!%p1834_p10)
}
  0x55   : > { %s1838_s20 = scalar_lea.vmem %s390_s30, 256  ;;  %p1846_p4 = scmp.lt.s32.totalorder %s390_s30, %s390_s30 }
  0x56   : > { %p1839_p1 = scmp.ne.s32.totalorder %s390_s30, %s1838_s20  ;;  %p1847_p7 = scmp.lt.s32.totalorder %s1838_s20, %s1838_s20 }
  0x58   : > { %p1841_p2 = pnand %p1839_p1, %p2106_p0  ;;  %p1848_p8 = por %p1847_p7, %p1846_p4 }
  0x5a   : > { %p1842_p3 = pneg %p1841_p2 }
  0x5c   : > { %p1849_p11 = pnand %p1848_p8, %p1842_p3 }
  0x5e   : > { %1852 = shalt.err (!%p1849_p11)
}
  0x5f   : > { %1664 = dma.hbm_to_vmem [thread:$0]  (!%p2092_p12), %s2405_s8, 256, %s390_s30, [#allocation7], %s1961_s21, %s1961_s21, %s1962_s10  }
  0x60   : > { %p2434_p13 = scmp.ne.s32.totalorder %s2430_s15, 0 }
  0x61   : > { %p2435_p5 = scmp.eq.s32.totalorder (!%p2434_p13), %s2056_s25, 0 }
  0x62   : > { %421 = sbr.rel (%p2434_p13) target bundleno = 1359 (0x54f), region = 56 }
  0x69   : > { %1926 = dma.done.wait (%p2435_p5), [#allocation4], 256   ;;  %p2436_p0 = pmov %p2435_p5 }
  0x6b   : > { %1928 = vsyncadd (%p2436_p0), [#allocation4], 4294967040  ;;  %p2437_p6 = pmov %p2436_p0 }
  0x6c   : > { %p2438_p9 = pmov %p2436_p0 }
  0x6d   : > { %1930 = dma.done.wait (%p2437_p6), [#allocation7], 1280  }
  0x6e   : > { %1932 = vsyncadd (%p2438_p9), [#allocation7], 4294966016  ;;  %p489_p10 = scmp.lt.s32.totalorder %s2056_s25, 1  ;;  %v1964_v0 = vmov 0   ;;  %v1723_v1 = vld [vmem:[%s2399_s2 + $0x4] ss:$8 sps:$4 sm:$0xff]  }
  0x6f   : > { %671 = vmatprep.mubr.bf16.mxu0 %v1964_v0  ;;  %892 = vmatprep.mubr.bf16.mxu1 %v1964_v0  ;;  %v1725_v2 = vld [vmem:[%s2399_s2] ss:$8 sps:$4 sm:$0xff]   ;;  %v1726_v3 = vld [vmem:[%s2399_s2 + $0x14] ss:$8 sps:$4 sm:$0xff]   ;;  %v1728_v4 = vld [vmem:[%s2399_s2 + $0x10] ss:$8 sps:$4 sm:$0xff]  }
  0x70   : > { %1722 = vset.pattern.permute.xlu0 %v1964_v0  ;;  %s2178_s6 = scalar_select %p489_p10, %s2056_s25, 1  ;;  %639 = vmatprep.subr.bf16.mxu0 %v1723_v1  ;;  %v1729_v5 = vld [vmem:[%s2399_s2 + $0x24] ss:$8 sps:$4 sm:$0xff]   ;;  %v1731_v6 = vld [vmem:[%s2399_s2 + $0x20] ss:$8 sps:$4 sm:$0xff]   ;;  %vm614_vm0 = vcmask 523264  }
  0x71   : > { %640 = vmatpush1.bf16.msra.mxu0 %v1725_v2  ;;  %v1732_v7 = vld [vmem:[%s2399_s2 + $0x34] ss:$8 sps:$4 sm:$0xff]   ;;  %v1734_v8 = vld [vmem:[%s2399_s2 + $0x30] ss:$8 sps:$4 sm:$0xff]   ;;  %v957_v26 = vld [vmem:[%s2401_s4 + $0x8] sm:$0x1] }
  0x72   : > { %s1607_s10 = sshll.u32 %s2178_s6, 6  ;;  %641 = vmatprep.subr.bf16.mxu0 %v1726_v3  ;;  %v1755_v25 = vld [vmem:[#allocation3 + $0x4] ss:$8 sps:$4 sm:$0x1f]   ;;  %965 = vperm.xlu0 %1722, %v957_v26   ;;  %vm972_vm1 = vcmask 1040384   ;;  %s1609_s26 = sshll.u32 %s2178_s6, 5  ;;  %vm1622_vm2 = vmpackc.low %vm614_vm0, %vm614_vm0 }
  0x73   : > { %s2199_s20 = scalar_lea.vmem %s2397_s0, %s1607_s10  ;;  %s2213_s27 = scalar_lea.vmem %s2398_s1, %s1607_s10  ;;  %v956_v27 = vld [vmem:[%s2401_s4] sm:$0xff]  ;;  %vm1227_vm3 = vcmask 261120   ;;  %vm1318_vm5 = vcmask 516096   ;;  %vm1966_vm6 = vmmov 0   ;;  %vm1307_vm7 = vcmask 253952  }
  0x74   : > { %v1735_v9 = vld [vmem:[%s2199_s20] sm:$0xff]   ;;  %v2223_v12 = vld [vmem:[%s2213_s27 + $0x14] ss:$8 sps:$4 sm:$0xff]   ;;  %v2227_v13 = vld [vmem:[%s2213_s27 + $0x10] ss:$8 sps:$4 sm:$0xff]   ;;  %s503_s24 = scalar_lea.vmem %s2408_s11, %s1609_s26  ;;  %s508_s18 = scalar_lea.vmem %s2409_s12, %s1609_s26 }
  0x75   : > { %642 = vmatpush1.bf16.msra.mxu0 %v1728_v4  ;;  %v2217_v10 = vld [vmem:[%s2213_s27 + $0x4] ss:$8 sps:$4 sm:$0xff]   ;;  %v2220_v11 = vld [vmem:[%s2213_s27] ss:$8 sps:$4 sm:$0xff]   ;;  %v1737_v17 = vld [vmem:[%s2199_s20 + $0x10] sm:$0xff]   ;;  %s2315_s6 = sand.u32 1, %s1947_s22  }
  0x76   : > { %643 = vmatprep.subr.bf16.mxu0 %v1729_v5  ;;  %860 = vmatprep.subr.bf16.mxu1 %v2217_v10  ;;  %v2231_v14 = vld [vmem:[%s2213_s27 + $0x24] ss:$8 sps:$4 sm:$0xff]   ;;  %v2238_v15 = vld [vmem:[%s2213_s27 + $0x20] ss:$8 sps:$4 sm:$0xff]   ;;  %v1738_v18 = vld [vmem:[%s2199_s20 + $0x18] sm:$0xff]   ;;  %s468_s28 = scalar_lea.vmem [#allocation9], %s2315_s6 }
  0x77   : > { %861 = vmatpush1.bf16.msra.mxu1 %v2220_v11  ;;  %v1736_v16 = vld [vmem:[%s2199_s20 + $0x8] sm:$0xff]   ;;  %v1739_v19 = vld [vmem:[%s2199_s20 + $0x20] sm:$0xff]   ;;  %v1741_v21 = vld [vmem:[%s2199_s20 + $0x30] sm:$0xff]   ;;  %960 = vperm.xlu0 %1722, %v956_v27   ;;  %s1603_s29 = sshll.u32 %s2056_s25, 4  ;;  %s1347_s19 = sshll.u32 %s468_s28, 4  ;;  %s1348_s19 = int_to_ptr.vmem [resolvable:$true] %s1347_s19 }
  0x78   : > { %862 = vmatprep.subr.bf16.mxu1 %v2223_v12  ;;  %v1740_v20 = vld [vmem:[%s2199_s20 + $0x28] sm:$0xff]   ;;  %v1742_v22 = vld [vmem:[%s2199_s20 + $0x38] sm:$0xff]   ;;  %vm1633_vm4 = vmpackc.low %vm1227_vm3, %vm1227_vm3  ;;  %s2328_s20 = scalar_lea.hbm %s2406_s9, %s1603_s29  ;;  %s1853_s14 = scalar_lea.vmem %s1348_s19, 16 }
  0x79   : > { %644 = vmatpush1.bf16.msra.mxu0 %v1731_v6  ;;  %v2263_v23 = vld [vmem:[%s2213_s27 + $0x34] ss:$8 sps:$4 sm:$0xff]   ;;  %v2266_v24 = vld [vmem:[%s2213_s27 + $0x30] ss:$8 sps:$4 sm:$0xff]   ;;  %p1854_p12 = scmp.ne.s32.totalorder %s1348_s19, %s1853_s14  ;;  %p2439_p1 = scmp.ne.s32.totalorder %s2427_s13, 0 }
  0x7a   : > { %645 = vmatprep.subr.bf16.mxu0 %v1732_v7  ;;  %s1968_s15 = smov [#allocation9]  }
  0x7b   : > { %863 = vmatpush1.bf16.msra.mxu1 %v2227_v13  ;;  %p1855_p2 = pnand %p1854_p12, %p2439_p1 }
  0x7c   : > { %864 = vmatprep.subr.bf16.mxu1 %v2231_v14 }
  0x7d   : > { %646 = vmatpush1.bf16.msra.mxu0 %v1734_v8  ;;  %p1856_p3 = pneg %p1855_p2 }
  0x7f   : > { %865 = vmatpush1.bf16.msra.mxu1 %v2238_v15 }
  0x80   : > { %1576 = vmatmul.mubr.msk.bf16.vlgmr.msra.gmra.mrb[0].mxu0 %vm614_vm0, %v1735_v9  ;;  %866 = vmatprep.subr.bf16.mxu1 %v2263_v23 }
  0x81   : > { %681 = vmatprep.mubr.bf16.mxu0 %v1964_v0 }
  0x83   : > { %867 = vmatpush1.bf16.msra.mxu1 %v2266_v24 }
  0x86   : > { %1593 = vmatmul.mubr.msk.bf16.vlgmr.msra.gmra.mrb[0].mxu1 %vm614_vm0, %v1755_v25 }
  0x87   : > { %941 = vmatprep.mubr.bf16.mxu1 %v1964_v0 }
  0x88   : > { %1577 = vmatmul.mubr.msk.bf16.gmra.mrb[4].mxu0 %vm614_vm0, %v1736_v16 }
  0x89   : > { %691 = vmatprep.mubr.bf16.mxu0 %v1964_v0 }
  0x90   : > { %1578 = vmatmul.mubr.msk.bf16.gmra.mrb[8].mxu0 %vm614_vm0, %v1737_v17 }
  0x91   : > { %701 = vmatprep.mubr.bf16.mxu0 %v1964_v0 }
  0x98   : > { %1579 = vmatmul.mubr.msk.bf16.gmra.mrb[12].mxu0 %vm614_vm0, %v1738_v18  ;;  %v1756_v18 = vld [vmem:[#allocation3] ss:$8 sps:$4 sm:$0x1f]  }
  0x99   : > { %711 = vmatprep.mubr.bf16.mxu0 %v1964_v0 }
  0xa0   : > { %1580 = vmatmul.mubr.msk.bf16.gmra.mrb[16].mxu0 %vm614_vm0, %v1739_v19 }
  0xa1   : > { %721 = vmatprep.mubr.bf16.mxu0 %v1964_v0 }
  0xa8   : > { %1581 = vmatmul.mubr.msk.bf16.gmra.mrb[20].mxu0 %vm614_vm0, %v1740_v20 }
  0xa9   : > { %731 = vmatprep.mubr.bf16.mxu0 %v1964_v0 }
  0xb0   : > { %1582 = vmatmul.mubr.msk.bf16.gmra.mrb[24].mxu0 %vm614_vm0, %v1741_v21 }
  0xb1   : > { %741 = vmatprep.mubr.bf16.mxu0 %v1964_v0 }
  0xb8   : > { %1583 = vmatmul.mubr.msk.bf16.gmra.mrb[28].mxu0 %vm614_vm0, %v1742_v22 }
  0xf1   : > { %v966_v19 = vpop.permute.xlu0 %965 }
  0xf6   : > { %v961_v26 = vpop.permute.xlu0 %960 }
 0x153   : > { %v673_v28 = vpop.f32.mrb[0].mxu0 }
 0x154   : > { %v675_v29 = vpop.f32.mrb[1].mxu0 }
 0x155   : > { %v677_v30 = vpop.f32.mrb[2].mxu0 }
 0x156   : > { %v752_v31 = vpack.c.bf16 %v677_v30, %v673_v28  ;;  %v679_v32 = vpop.f32.mrb[3].mxu0 }
 0x157   : > { %v753_v33 = vpack.c.bf16 %v679_v32, %v675_v29 }
 0x159   : > { %909 = vmatprep.subr.bf16.mxu1 %v753_v33  ;;  %1025 = vmatprep.subr.bf16.mxu0 %v753_v33 }
 0x15a   : > { %910 = vmatpush1.bf16.msra.mxu1 %v752_v31  ;;  %1026 = vmatpush1.bf16.xpose.msra.mxu0 %v752_v31 }
 0x15b   : > { %v683_v34 = vpop.f32.mrb[4].mxu0 }
 0x15c   : > { %v685_v35 = vpop.f32.mrb[5].mxu0 }
 0x15d   : > { %v687_v36 = vpop.f32.mrb[6].mxu0 }
 0x15e   : > { %v754_v37 = vpack.c.bf16 %v687_v36, %v683_v34  ;;  %v689_v38 = vpop.f32.mrb[7].mxu0 }
 0x15f   : > { %v755_v39 = vpack.c.bf16 %v689_v38, %v685_v35 }
 0x161   : > { %911 = vmatprep.subr.bf16.mxu1 %v755_v39  ;;  %1027 = vmatprep.subr.bf16.mxu0 %v755_v39 }
 0x162   : > { %912 = vmatpush1.bf16.msra.mxu1 %v754_v37  ;;  %1028 = vmatpush1.bf16.xpose.msra.mxu0 %v754_v37 }
 0x163   : > { %v693_v40 = vpop.f32.mrb[8].mxu0 }
 0x164   : > { %v695_v41 = vpop.f32.mrb[9].mxu0 }
 0x165   : > { %v697_v42 = vpop.f32.mrb[10].mxu0 }
 0x166   : > { %v756_v43 = vpack.c.bf16 %v697_v42, %v693_v40  ;;  %v699_v44 = vpop.f32.mrb[11].mxu0 }
 0x167   : > { %v757_v45 = vpack.c.bf16 %v699_v44, %v695_v41 }
 0x169   : > { %913 = vmatprep.subr.bf16.mxu1 %v757_v45  ;;  %1029 = vmatprep.subr.bf16.mxu0 %v757_v45 }
 0x16a   : > { %914 = vmatpush1.bf16.msra.mxu1 %v756_v43  ;;  %1030 = vmatpush1.bf16.xpose.msra.mxu0 %v756_v43 }
 0x16b   : > { %v703_v46 = vpop.f32.mrb[12].mxu0 }
 0x16c   : > { %v705_v47 = vpop.f32.mrb[13].mxu0 }
 0x16d   : > { %v707_v48 = vpop.f32.mrb[14].mxu0 }
 0x16e   : > { %v758_v49 = vpack.c.bf16 %v707_v48, %v703_v46  ;;  %v709_v50 = vpop.f32.mrb[15].mxu0 }
 0x16f   : > { %v759_v51 = vpack.c.bf16 %v709_v50, %v705_v47 }
 0x171   : > { %915 = vmatprep.subr.bf16.mxu1 %v759_v51  ;;  %1031 = vmatprep.subr.bf16.mxu0 %v759_v51 }
 0x172   : > { %916 = vmatpush1.bf16.msra.mxu1 %v758_v49  ;;  %1032 = vmatpush1.bf16.xpose.msra.mxu0 %v758_v49 }
 0x173   : > { %v713_v52 = vpop.f32.mrb[16].mxu0 }
 0x174   : > { %v715_v53 = vpop.f32.mrb[17].mxu0 }
 0x175   : > { %v717_v54 = vpop.f32.mrb[18].mxu0 }
 0x176   : > { %v760_v55 = vpack.c.bf16 %v717_v54, %v713_v52  ;;  %v719_v56 = vpop.f32.mrb[19].mxu0 }
 0x177   : > { %v761_v57 = vpack.c.bf16 %v719_v56, %v715_v53 }
 0x179   : > { %917 = vmatprep.subr.bf16.mxu1 %v761_v57  ;;  %1033 = vmatprep.subr.bf16.mxu0 %v761_v57 }
 0x17a   : > { %918 = vmatpush1.bf16.msra.mxu1 %v760_v55  ;;  %1034 = vmatpush1.bf16.xpose.msra.mxu0 %v760_v55 }
 0x17b   : > { %v723_v58 = vpop.f32.mrb[20].mxu0 }
 0x17c   : > { %v725_v59 = vpop.f32.mrb[21].mxu0 }
 0x17d   : > { %v727_v60 = vpop.f32.mrb[22].mxu0 }
 0x17e   : > { %v762_v61 = vpack.c.bf16 %v727_v60, %v723_v58  ;;  %v729_v62 = vpop.f32.mrb[23].mxu0 }
 0x17f   : > { %v763_v63 = vpack.c.bf16 %v729_v62, %v725_v59 }
 0x181   : > { %919 = vmatprep.subr.bf16.mxu1 %v763_v63  ;;  %1035 = vmatprep.subr.bf16.mxu0 %v763_v63 }
 0x182   : > { %920 = vmatpush1.bf16.msra.mxu1 %v762_v61  ;;  %1036 = vmatpush1.bf16.xpose.msra.mxu0 %v762_v61 }
 0x183   : > { %v733_v0 = vpop.f32.mrb[24].mxu0 }
 0x184   : > { %v735_v1 = vpop.f32.mrb[25].mxu0 }
 0x185   : > { %v737_v2 = vpop.f32.mrb[26].mxu0 }
 0x186   : > { %v764_v3 = vpack.c.bf16 %v737_v2, %v733_v0  ;;  %v739_v4 = vpop.f32.mrb[27].mxu0 }
 0x187   : > { %v765_v5 = vpack.c.bf16 %v739_v4, %v735_v1 }
 0x189   : > { %921 = vmatprep.subr.bf16.mxu1 %v765_v5  ;;  %1037 = vmatprep.subr.bf16.mxu0 %v765_v5 }
 0x18a   : > { %922 = vmatpush1.bf16.msra.mxu1 %v764_v3  ;;  %1038 = vmatpush1.bf16.xpose.msra.mxu0 %v764_v3 }
 0x18b   : > { %v743_v6 = vpop.f32.mrb[28].mxu0 }
 0x18c   : > { %v745_v7 = vpop.f32.mrb[29].mxu0 }
 0x18d   : > { %v747_v8 = vpop.f32.mrb[30].mxu0 }
 0x18e   : > { %v766_v9 = vpack.c.bf16 %v747_v8, %v743_v6  ;;  %v749_v16 = vpop.f32.mrb[31].mxu0 }
 0x18f   : > { %v767_v17 = vpack.c.bf16 %v749_v16, %v745_v7 }
 0x191   : > { %923 = vmatprep.subr.bf16.mxu1 %v767_v17  ;;  %1039 = vmatprep.subr.bf16.mxu0 %v767_v17 }
 0x192   : > { %924 = vmatpush1.bf16.msra.mxu1 %v766_v9  ;;  %1040 = vmatpush1.bf16.xpose.msra.mxu0 %v766_v9 }
 0x193   : > { %1066 = vmatprep.subr.bf16.mxu1 %v2217_v10 }
 0x195   : > { %942 = vmatmul.mubr.bf16.vlgmr.msra.gmra.mrb[0].mxu1 %v1756_v18 }
 0x19b   : > { %1067 = vmatpush1.bf16.xpose.msra.mxu1 %v2220_v11 }
 0x19c   : > { %1068 = vmatprep.subr.bf16.mxu1 %v2223_v12 }
 0x1a3   : > { %1069 = vmatpush1.bf16.xpose.msra.mxu1 %v2227_v13 }
 0x1a4   : > { %1070 = vmatprep.subr.bf16.mxu1 %v2231_v14 }
 0x1ab   : > { %1071 = vmatpush1.bf16.xpose.msra.mxu1 %v2238_v15 }
 0x1ac   : > { %1072 = vmatprep.subr.bf16.mxu1 %v2263_v23 }
 0x1b3   : > { %1073 = vmatpush1.bf16.xpose.msra.mxu1 %v2266_v24 }
 0x268   : > { %v943_v20 = vpop.f32.mrb[0].mxu1 }
 0x269   : > { %v945_v21 = vpop.f32.mrb[1].mxu1  ;;  %v952_v22 = vmul.f32 2.0, %v943_v20 }
 0x26a   : > { %v947_v10 = vpop.f32.mrb[2].mxu1  ;;  %v953_v25 = vmul.f32 2.0, %v945_v21  ;;  %v1132_v21 = vld [vmem:[#allocation6 + $0x8] sm:$0xff] }
 0x26b   : > { %v954_v11 = vmul.f32 2.0, %v947_v10  ;;  %v949_v27 = vpop.f32.mrb[3].mxu1  ;;  %v968_v28 = vsub.f32 %v952_v22, %v961_v26  ;;  %v1134_v22 = vld [vmem:[#allocation6 + $0x18] sm:$0xff] }
 0x26c   : > { %v955_v12 = vmul.f32 2.0, %v949_v27  ;;  %v969_v29 = vsub.f32 %v953_v25, %v961_v26  ;;  %v1621_v10 = vpack.c.bf16 %v1134_v22, %v1132_v21  ;;  %v1131_v25 = vld [vmem:[#allocation6] sm:$0xff]  ;;  %v1133_v26 = vld [vmem:[#allocation6 + $0x10] sm:$0xff]  ;;  %v1136_v27 = vld [vmem:[#allocation6 + $0x28] sm:$0xff] }
 0x26d   : > { %v970_v13 = vsub.f32 %v954_v11, %v966_v19  ;;  %v1624_v11 = vpack.c.bf16 %v1133_v26, %v1131_v25 }
 0x26e   : > { %v971_v14 = vsub.f32 %v955_v12, %v966_v19  ;;  %1623 = vmatprep.subr.msk.bf16.mxu0 %vm1622_vm2, %v1621_v10  ;;  %v1138_v12 = vld [vmem:[#allocation6 + $0x38] sm:$0xff] }
 0x26f   : > { %v973_v15 = vsel %vm972_vm1, %v970_v13, -inf }
 0x270   : > { %v974_v23 = vmax.f32 %v968_v28, %v973_v15  ;;  %v981_v24 = vsel %vm972_vm1, %v971_v14, -inf  ;;  %v1225_v15 = vld [vmem:[#allocation8] sm:$0xff] }
 0x271   : > { %v982_v30 = vmax.f32 %v969_v29, %v981_v24  ;;  %v1965_v24 = vmov 0.0|0.0  }
 0x272   : > { %v975_v31 = vrot.slane %v974_v23, 4  ;;  %1631 = vmatprep.subr.bf16.mxu1 %v1965_v24 }
 0x273   : > { %v983_v32 = vrot.slane %v982_v30, 4 }
 0x274   : > { %v976_v33 = vmax.f32 %v974_v23, %v975_v31  ;;  %v1226_v23 = vld [vmem:[#allocation8 + $0x8] sm:$0xff] }
 0x275   : > { %v984_v34 = vmax.f32 %v982_v30, %v983_v32  ;;  %v1632_v30 = vpack.c.bf16 %v1226_v23, %v1225_v15  ;;  %v1111_v32 = vld [vmem:[%s2402_s5] sm:$0xff] }
 0x276   : > { %v977_v35 = vrot.slane %v976_v33, 2 }
 0x277   : > { %v985_v36 = vrot.slane %v984_v34, 2 }
 0x278   : > { %v978_v37 = vmax.f32 %v976_v33, %v977_v35 }
 0x279   : > { %v986_v38 = vmax.f32 %v984_v34, %v985_v36  ;;  %v1112_v34 = vld [vmem:[%s2402_s5 + $0x8] sm:$0xff] }
 0x27a   : > { %v979_v39 = vrot.slane %v978_v37, 1 }
 0x27b   : > { %v987_v40 = vrot.slane %v986_v38, 1 }
 0x27c   : > { %v980_v41 = vmax.f32 %v978_v37, %v979_v39 }
 0x27d   : > { %v988_v42 = vmax.f32 %v986_v38, %v987_v40 }
 0x27e   : > { %v989_v43 = vsub.f32 %v968_v28, %v980_v41  ;;  %v991_v44 = vsub.f32 %v970_v13, %v980_v41  ;;  %v1626_v13 = vpack.c.bf16 %v1138_v12, %v1136_v27  ;;  %v1135_v28 = vld [vmem:[#allocation6 + $0x20] sm:$0xff] }
 0x27f   : > { %v990_v45 = vsub.f32 %v969_v29, %v988_v42  ;;  %v992_v46 = vsub.f32 %v971_v14, %v988_v42  ;;  %v1137_v14 = vld [vmem:[#allocation6 + $0x30] sm:$0xff] }
 0x280   : > { %v993_v47 = vmul.f32 1.442695, %v989_v43  ;;  %v997_v48 = vmul.f32 1.442695, %v991_v44  ;;  %v1629_v29 = vpack.c.bf16 %v1137_v14, %v1135_v28 }
 0x281   : > { %v995_v49 = vmul.f32 1.442695, %v990_v45  ;;  %v999_v50 = vmul.f32 1.442695, %v992_v46 }
 0x282   : > { %1757 = vpow2.f32 %v993_v47 }
 0x283   : > { %1759 = vpow2.f32 %v997_v48 }
 0x284   : > { %1761 = vpow2.f32 %v995_v49 }
 0x285   : > { %1763 = vpow2.f32 %v999_v50 }
 0x28c   : > { %v1758_v51 = vpop.eup %1757 }
 0x28d   : > { %v1760_v52 = vpop.eup %1759 }
 0x28e   : > { %v1762_v53 = vpop.eup %1761  ;;  %v1001_v54 = vsel %vm972_vm1, %v1760_v52, 0.0 }
 0x28f   : > { %v1764_v55 = vpop.eup %1763  ;;  %v1002_v56 = vadd.f32 %v1758_v51, %v1001_v54 }
 0x290   : > { %v1009_v57 = vsel %vm972_vm1, %v1764_v55, 0.0 }
 0x291   : > { %v1003_v58 = vrot.slane %v1002_v56, 4  ;;  %v1010_v59 = vadd.f32 %v1762_v53, %v1009_v57 }
 0x293   : > { %v1004_v60 = vadd.f32 %v1003_v58, %v1002_v56  ;;  %v1011_v61 = vrot.slane %v1010_v59, 4 }
 0x295   : > { %v1005_v62 = vrot.slane %v1004_v60, 2  ;;  %v1012_v63 = vadd.f32 %v1011_v61, %v1010_v59 }
 0x297   : > { %v1006_v0 = vadd.f32 %v1005_v62, %v1004_v60  ;;  %v1013_v1 = vrot.slane %v1012_v63, 2  ;;  %v1967_v62 = vmov 0.0  }
 0x299   : > { %v1007_v2 = vrot.slane %v1006_v0, 1  ;;  %v1014_v3 = vadd.f32 %v1013_v1, %v1012_v63  ;;  %v1139_v63 = vld [vmem:[%s2404_s7] sm:$0x1] }
 0x29b   : > { %v1008_v4 = vadd.f32 %v1007_v2, %v1006_v0  ;;  %v1015_v5 = vrot.slane %v1014_v3, 1 }
 0x29d   : > { %1765 = vrcp.f32 %v1008_v4  ;;  %v1016_v6 = vadd.f32 %v1015_v5, %v1014_v3 }
 0x29f   : > { %1767 = vrcp.f32 %v1016_v6 }
 0x2a7   : > { %v1766_v7 = vpop.eup %1765 }
 0x2a8   : > { %v1019_v8 = vmul.f32 %v1766_v7, %v1758_v51  ;;  %v1021_v9 = vmul.f32 %v1766_v7, %v1760_v52 }
 0x2a9   : > { %v1768_v16 = vpop.eup %1767 }
 0x2aa   : > { %v1020_v17 = vmul.f32 %v1768_v16, %v1762_v53  ;;  %v1022_v18 = vmul.f32 %v1768_v16, %v1764_v55  ;;  %v1023_v19 = vpack.c.bf16 %v1021_v9, %v1019_v8  ;;  %1311 = vst [vmem:[%s503_s24] sm:$0xff] %v1019_v8  ;;  %1313 = vst [vmem:[%s503_s24 + $0x10] sm:$0x1] %v1021_v9 }
 0x2ac   : > { %v1024_v20 = vpack.c.bf16 %v1022_v18, %v1020_v17  ;;  %1312 = vst [vmem:[%s503_s24 + $0x8] sm:$0xff] %v1020_v17  ;;  %1314 = vst [vmem:[%s503_s24 + $0x18] sm:$0x1] %v1022_v18  ;;  %s1321_s24 = scalar_lea.sflag [#allocation5], %s2315_s6 }
 0x2ae   : > { %1057 = vmatprep.mubr.bf16.mxu0 %v1024_v20  ;;  %1098 = vmatprep.mubr.bf16.mxu1 %v1024_v20 }
 0x2af   : > { %1058 = vmatmul.mubr.bf16.vlgmr.msra.gmra.mrb[32].mxu0 %v1023_v19  ;;  %1099 = vmatmul.mubr.bf16.vlgmr.msra.gmra.mrb[4].mxu1 %v1023_v19 }
 0x2b0   : > { %1625 = vmatpush1.bf16.xpose.msra.mxu0 %v1624_v11  ;;  %1634 = vmatpush3.bf16.xpose.msk.msra.mxu1 %vm1633_vm4, %v1632_v30 }
 0x2b1   : > { %1628 = vmatprep.subr.msk.bf16.mxu0 %vm1622_vm2, %v1626_v13  ;;  %1618 = vmatprep.mubr.msk.f32.mxu1 %vm1966_vm6, %v1967_v62 }
 0x2b8   : > { %1630 = vmatpush1.bf16.xpose.msra.mxu0 %v1629_v29 }
 0x382   : > { %v1059_v31 = vpop.f32.mrb[32].mxu0  ;;  %v1100_v33 = vpop.f32.mrb[4].mxu1 }
 0x383   : > { %v1107_v35 = vmul.f32 0.00390625, %v1059_v31  ;;  %v1108_v36 = vmul.f32 0.00390625, %v1100_v33  ;;  %v1061_v37 = vpop.f32.mrb[33].mxu0  ;;  %v1102_v38 = vpop.f32.mrb[5].mxu1 }
 0x384   : > { %v1062_v39 = vpop.f32.mrb[34].mxu0  ;;  %v1103_v40 = vpop.f32.mrb[6].mxu1 }
 0x385   : > { %v1113_v41 = vmul.f32 %v1111_v32, %v1107_v35  ;;  %1315 = vst [vmem:[%s508_s18] sm:$0xff] %v1107_v35  ;;  %v1114_v42 = vmul.f32 %v1112_v34, %v1108_v36  ;;  %1316 = vst.msk [vmem:[%s508_s18 + $0x8] sm:$0xff] %vm614_vm0, %v1108_v36  ;;  %v1109_v43 = vmul.f32 0.00390625, %v1062_v39  ;;  %v1110_v44 = vmul.f32 0.00390625, %v1103_v40  ;;  %v1064_v45 = vpop.f32.mrb[35].mxu0  ;;  %v1105_v46 = vpop.f32.mrb[7].mxu1 }
 0x387   : > { %v1115_v47 = vrot.slane %v1113_v41, 4  ;;  %v1121_v48 = vsel %vm614_vm0, %v1114_v42, 0.0  ;;  %1317 = vst [vmem:[%s508_s18 + $0x10] sm:$0x1] %v1109_v43  ;;  %1319 = vst.msk [vmem:[%s508_s18 + $0x18] sm:$0x1] %vm1318_vm5, %v1110_v44 }
 0x388   : > { %v1122_v49 = vrot.slane %v1121_v48, 4  ;;  %s1857_s18 = sshll.u32 %s1968_s15, 4  ;;  %s1858_s18 = int_to_ptr.vmem [resolvable:$false] %s1857_s18 }
 0x389   : > { %v1116_v50 = vadd.f32 %v1115_v47, %v1113_v41  ;;  %s1859_s16 = scalar_lea.vmem %s1858_s18, 32  ;;  %p1860_p4 = scmp.lt.s32.totalorder %s1348_s19, %s1858_s18 }
 0x38a   : > { %v1123_v51 = vadd.f32 %v1122_v49, %v1121_v48  ;;  %p1861_p7 = scmp.lt.s32.totalorder %s1859_s16, %s1853_s14 }
 0x38b   : > { %v1117_v52 = vrot.slane %v1116_v50, 2 }
 0x38c   : > { %v1124_v53 = vrot.slane %v1123_v51, 2  ;;  %p1862_p8 = por %p1861_p7, %p1860_p4 }
 0x38d   : > { %v1118_v54 = vadd.f32 %v1117_v52, %v1116_v50 }
 0x38e   : > { %v1125_v55 = vadd.f32 %v1124_v53, %v1123_v51  ;;  %p1863_p11 = pnand %p1862_p8, %p1856_p3 }
 0x38f   : > { %v1119_v56 = vrot.slane %v1118_v54, 1 }
 0x390   : > { %v1126_v57 = vrot.slane %v1125_v55, 1 }
 0x391   : > { %v1120_v58 = vadd.f32 %v1119_v56, %v1118_v54 }
 0x392   : > { %v1127_v59 = vadd.f32 %v1126_v57, %v1125_v55 }
 0x393   : > { %v1129_v61 = vmul.f32 0.125, %v1120_v58 }
 0x394   : > { %v1130_v60 = vmul.f32 0.125, %v1127_v59 }
 0x396   : > { %1599 = vmatprep.mubr.msk.f32.mxu0 %vm614_vm0, %v1130_v60 }
 0x397   : > { %1220 = vmatmul.mubr.f32.vlgmr.msra.gmra.mrb[36].mxu0 %v1129_v61 }
 0x46a   : > { %v1221_v0 = vpop.f32.mrb[36].mxu0 }
 0x46b   : > { %v1222_v1 = vadd.f32 %v1221_v0, %v1139_v63  ;;  %v1223_v2 = vpop.f32.mrb[37].mxu0 }
 0x46d   : > { %1619 = vmatmul.mubr.msk.f32.vlgmr.msra.gmra.mrb[8].mxu1 %vm1227_vm3, %v1222_v1  ;;  %1308 = vst.msk [vmem:[%s468_s28] sm:$0x1] %vm1307_vm7, %v1222_v1 }
 0x46e   : > { %1866 = shalt.err (!%p1863_p11)
}
 0x46f   : > { %s1867_s21 = scalar_lea.hbm %s2328_s20, 16  ;;  %s1871_s27 = scalar_lea.hbm %s2406_s9, 32 }
 0x470   : > { %p1868_p13 = scmp.ne.s32.totalorder %s2328_s20, %s1867_s21  ;;  %p1872_p6 = scmp.lt.u32.totalorder %s2328_s20, %s2406_s9 }
 0x471   : > { %p1873_p9 = scmp.lt.u32.totalorder %s1871_s27, %s1867_s21  ;;  %p1875_p12 = scmp.lt.u32.totalorder %s1867_s21, %s2328_s20 }
 0x472   : > { %p1869_p5 = pnand %p1868_p13, %p2439_p1 }
 0x473   : > { %p1874_p10 = por %p1873_p9, %p1872_p6 }
 0x474   : > { %p1870_p0 = pneg %p1869_p5 }
 0x475   : > { %p1876_p2 = por %p1875_p12, %p1874_p10 }
 0x477   : > { %p1877_p3 = pnand %p1876_p2, %p1870_p0 }
 0x479   : > { %1880 = shalt.err (!%p1877_p3)
}
 0x47a   : > { %1651 = dma.vmem_to_hbm [thread:$0]  (%p2439_p1), %s1348_s19, 16, %s2328_s20, %s1321_s24   ;;  %vm1309_vm8 = vcmask 122880  }
 0x47b   : > { %s474_s26 = scalar_lea.vmem [#allocation10], %s2315_s6  ;;  %s2440_s18 = sld [smem:[#allocation23_spill]] }
 0x47c   : > { %s1360_s17 = sshll.u32 %s474_s26, 4  ;;  %s1325_s21 = scalar_lea.sflag [#allocation11], %s2315_s6  ;;  %s2356_s17 = int_to_ptr.vmem [resolvable:$true] %s1360_s17 }
 0x47d   : > { %s1881_s23 = scalar_lea.vmem %s2356_s17, 16  ;;  %s1969_s25 = smov [#allocation10]  }
 0x47e   : > { %p1882_p4 = scmp.ne.s32.totalorder %s2356_s17, %s1881_s23  ;;  %s1885_s19 = sshll.u32 %s1969_s25, 4  ;;  %s1886_s19 = int_to_ptr.vmem [resolvable:$false] %s1885_s19 }
 0x47f   : > { %s1887_s20 = scalar_lea.vmem %s1886_s19, 32  ;;  %p1888_p11 = scmp.lt.s32.totalorder %s2356_s17, %s1886_s19 }
 0x480   : > { %p1883_p7 = pnand %p1882_p4, %p2439_p1  ;;  %p1889_p13 = scmp.lt.s32.totalorder %s1887_s20, %s1881_s23 }
 0x481   : > { %s2354_s16 = scalar_lea.hbm %s2440_s18, %s1603_s29 }
 0x482   : > { %p1884_p8 = pneg %p1883_p7  ;;  %p1890_p5 = por %p1889_p13, %p1888_p11 }
 0x484   : > { %p1891_p0 = pnand %p1890_p5, %p1884_p8 }
 0x540   : > { %v1303_v3 = vpop.f32.mrb[8].mxu1 }
 0x541   : > { %1310 = vst.msk [vmem:[%s474_s26] sm:$0x1] %vm1309_vm8, %v1303_v3  ;;  %v1620_v4 = vpop.f32.mrb[9].mxu1 }
 0x542   : > { %1894 = shalt.err (!%p1891_p0)
}
 0x543   : > { %s1895_s6 = scalar_lea.hbm %s2354_s16, 16  ;;  %s1899_s30 = scalar_lea.hbm %s2440_s18, 32 }
 0x544   : > { %p1896_p6 = scmp.ne.s32.totalorder %s2354_s16, %s1895_s6  ;;  %p1900_p12 = scmp.lt.u32.totalorder %s2354_s16, %s2440_s18 }
 0x545   : > { %p1901_p2 = scmp.lt.u32.totalorder %s1899_s30, %s1895_s6  ;;  %p1903_p4 = scmp.lt.u32.totalorder %s1895_s6, %s2354_s16 }
 0x546   : > { %p1897_p9 = pnand %p1896_p6, %p2439_p1 }
 0x547   : > { %p1902_p3 = por %p1901_p2, %p1900_p12 }
 0x548   : > { %p1898_p10 = pneg %p1897_p9 }
 0x549   : > { %p1904_p7 = por %p1903_p4, %p1902_p3 }
 0x54b   : > { %p1905_p8 = pnand %p1904_p7, %p1898_p10 }
 0x54d   : > { %1908 = shalt.err (!%p1905_p8)
}
 0x54e   : > { %1652 = dma.vmem_to_hbm [thread:$0]  (%p2439_p1), %s2356_s17, 16, %s2354_s16, %s1325_s21  }
 0x54f PF: > { %s2441_s28 = sld [smem:[#allocation18_spill]]  ;;  %s2442_s26 = sld [smem:[#allocation16_spill]] }
 0x550   : > { %s2443_s14 = sld [smem:[#allocation21_spill]] }
 0x555   : > { %p1678_p11 = scmp.ge.s32.totalorder %s2441_s28, 2  ;;  %s1378_s15 = sand.u32 1, %s2442_s26  }
 0x556   : > { %p2444_p13 = scmp.ne.s32.totalorder %s2443_s14, 0  ;;  %s1379_s23 = scalar_lea.sflag [#allocation5], %s1378_s15 }
 0x558   : > { %p1666_p5 = pnand %p1678_p11, %p2444_p13 }
 0x55a   : > { %1934 = dma.done.wait (!%p1666_p5), %s1379_s23, 16  }
 0x55b   : > { %1936 = vsyncadd (!%p1666_p5), %s1379_s23, 4294967280  ;;  %s1387_s25 = scalar_lea.sflag [#allocation11], %s1378_s15 }
 0x55c   : > { %1938 = dma.done.wait (!%p1666_p5), %s1387_s25, 16  }
 0x55d   : > { %1940 = vsyncadd (!%p1666_p5), %s1387_s25, 4294967280  ;;  %s2445_s24 = sld [smem:[#allocation19_spill]]  ;;  %s2446_s13 = sld [smem:[#allocation17_spill]] }
 0x55e   : > { %s2447_s23 = sld [smem:[#allocation20_spill]]  ;;  %s2448_s21 = smov %s1947_s22 }
 0x563   : > { %p28_p1 = scmp.ge.s32.totalorder %s2445_s24, 4   ;;  %s2449_s22 = smov %s2446_s13 }
 0x565   :  { %30 = sbr.rel (!%p28_p1) target bundleno = 10 (0xa), region = 148 }
 0x56c   :  { %1407 = vsyncpa [#allocation4], 1 }
 0x56d   :  { %1409 = vsyncpa [#allocation4 + $0x1], 1 }
 0x56e   :  { %1410 = vsyncpa [#allocation7], 1 }
 0x56f   :  { %1411 = vsyncpa [#allocation5], 1 }
 0x570   :  { %1413 = vsyncpa [#allocation5 + $0x1], 1 }
 0x571   :  { %1414 = vsyncpa [#allocation11], 1 }
 0x572   :  { %1416 = vsyncpa [#allocation11 + $0x1], 1 }

</bundles_post_ra>
